<compile_context>
chip_gen: v6e
topology: v6e:2x2x1
jax: 0.10.0
libtpu: 0.0.40
codegen_flags: <defaults>
</compile_context>

<pallas_src>
import functools

import jax
import jax.numpy as jnp
from jax.experimental import pallas as pl
from jax.experimental.pallas import tpu as pltpu


def _decoder_kernel(x_ref, m_ref, t1_ref, b1_ref, t2_ref, b2_ref, o_ref, mid_ref, *,
                    K, H1o, W1o, H2o, W2o, Cout, neg_slope):
    # x_ref / m_ref: (1, P1h, 2W*Cin) 2x-upsampled pooled values / int8 unpool mask,
    #                zero-padded by K-1 rows top+bottom (W padding is folded into T1).
    xu = x_ref[0]                                  # (P1h, 2W*Cin)  f32
    mk = m_ref[0].astype(jnp.float32)              # int8 0/1 -> f32

    # --- MaxUnpool2d(2): keep the upsampled value only where the argmax landed. ---
    u = jnp.where(mk > 0.0, xu, 0.0)

    # --- ConvTranspose2d #1 (stride 1, pad 0) as K banded-Toeplitz matmuls. ---
    acc1 = jnp.zeros((H1o, W1o * Cout), jnp.float32)
    for kh in range(K):
        acc1 = acc1 + jnp.dot(u[kh:kh + H1o, :], t1_ref[kh],
                              preferred_element_type=jnp.float32)
    y1 = acc1 + b1_ref[...]
    y1 = jnp.where(y1 >= 0.0, y1, neg_slope * y1)      # LeakyReLU

    # --- (K-1)-row zero halo for the second transposed conv.  The interior is fully
    #     overwritten every step; only the border bands are re-zeroed (cheap, and
    #     correct even when the "parallel" batch axis is split across cores). ---
    if K > 1:
        zero_band = jnp.zeros((K - 1, W1o * Cout), jnp.float32)
        mid_ref[0:K - 1, :] = zero_band
        mid_ref[K - 1 + H1o:2 * (K - 1) + H1o, :] = zero_band
    mid_ref[K - 1:K - 1 + H1o, :] = y1

    # --- ConvTranspose2d #2 + LeakyReLU. ---
    acc2 = jnp.zeros((H2o, W2o * Cout), jnp.float32)
    for kh in range(K):
        acc2 = acc2 + jnp.dot(mid_ref[kh:kh + H2o, :], t2_ref[kh],
                              preferred_element_type=jnp.float32)
    y2 = acc2 + b2_ref[...]
    y2 = jnp.where(y2 >= 0.0, y2, neg_slope * y2)
    o_ref[0] = y2.astype(o_ref.dtype)                  # lane-dense (H2o, W2o*Cout)


def _toeplitz_weight(w, w_in):
    """PyTorch ConvTranspose2d weight (Ci, Co, K, K) -> banded-Toeplitz matrices.

    Returns T of shape (K, w_in*Ci, w_out*Co) with w_out = w_in + K - 1 so that the
    stride-1 / no-pad transposed conv of a (H_in, w_in, Ci) map `v` is
        out[i, :] = sum_kh  vpad[i + kh].reshape(w_in*Ci) @ T[kh]
    where vpad is `v` zero-padded by K-1 rows on top and bottom (the W-direction
    padding is folded into the zero bands of T)."""
    ci, co, K, _ = w.shape
    w_out = w_in + K - 1
    # Spatially flipped so the kernel performs a plain (valid) correlation.
    wf = jnp.transpose(w, (2, 3, 0, 1))[::-1, ::-1].astype(jnp.float32)  # (K,K,Ci,Co)
    t = jnp.zeros((K, w_in, ci, w_out, co), jnp.float32)
    for j in range(w_out):
        lo = max(0, j - (K - 1))
        hi = min(w_in, j + 1)
        t = t.at[:, lo:hi, :, j, :].set(wf[:, lo - j + K - 1:hi - j + K - 1, :, :])
    return t.reshape(K, w_in * ci, w_out * co)


def decoder_forward(x, ind, w1, b1, w2, b2, ksize, neg_slope=0.01):
    """x, ind: NCHW (ind = MaxPool2d(2, return_indices=True) indices).
    w1: (Cin, Cout, K, K), b1: (Cout,), w2: (Cout, Cout, K, K), b2: (Cout,)."""
    N, Cin, H, W = x.shape
    Cout = w1.shape[1]
    K = ksize
    Hu, Wu = 2 * H, 2 * W                      # unpooled size
    H1o, W1o = Hu + K - 1, Wu + K - 1          # after conv-transpose #1
    H2o, W2o = H1o + K - 1, W1o + K - 1        # after conv-transpose #2
    P1h = Hu + 2 * (K - 1)                     # row halo for conv #1
    P2h = H1o + 2 * (K - 1)                    # row halo for conv #2

    # ---- XLA-side glue (layout plumbing only): NCHW->NHWC, 2x nearest upsample of
    #      values, int8 argmax mask, K-1 zero rows top/bottom, flatten (W, C) lanes.
    x_nhwc = jnp.transpose(x, (0, 2, 3, 1)).astype(jnp.float32)
    i_nhwc = jnp.transpose(ind, (0, 2, 3, 1)).astype(jnp.int32)
    xu = jnp.repeat(jnp.repeat(x_nhwc, 2, axis=1), 2, axis=2)           # (N,Hu,Wu,Cin)
    iu = jnp.repeat(jnp.repeat(i_nhwc, 2, axis=1), 2, axis=2)
    tgt = jnp.arange(Hu)[:, None] * Wu + jnp.arange(Wu)[None, :]        # flat out index
    mask = (iu == tgt[None, :, :, None]).astype(jnp.int8)               # 0/1 unpool mask
    hpad = ((0, 0), (K - 1, K - 1), (0, 0), (0, 0))
    xu_p = jnp.pad(xu, hpad).reshape(N, P1h, Wu * Cin)
    mk_p = jnp.pad(mask, hpad).reshape(N, P1h, Wu * Cin)                # pad 0 == "off"

    # ---- weights -> banded-Toeplitz form, biases tiled to lane-dense rows.
    t1 = _toeplitz_weight(w1, Wu)                          # (K, Wu*Cin,   W1o*Cout)
    t2 = _toeplitz_weight(w2, W1o)                         # (K, W1o*Cout, W2o*Cout)
    b1_t = jnp.tile(b1.astype(jnp.float32), W1o).reshape(1, W1o * Cout)
    b2_t = jnp.tile(b2.astype(jnp.float32), W2o).reshape(1, W2o * Cout)

    kernel = functools.partial(
        _decoder_kernel, K=K, H1o=H1o, W1o=W1o, H2o=H2o, W2o=W2o, Cout=Cout,
        neg_slope=neg_slope)

    out3 = pl.pallas_call(
        kernel,
        out_shape=jax.ShapeDtypeStruct((N, H2o, W2o * Cout), jnp.float32),
        grid=(N,),
        in_specs=[
            pl.BlockSpec((1, P1h, Wu * Cin), lambda n: (n, 0, 0)),
            pl.BlockSpec((1, P1h, Wu * Cin), lambda n: (n, 0, 0)),
            pl.BlockSpec((K, Wu * Cin, W1o * Cout), lambda n: (0, 0, 0)),
            pl.BlockSpec((1, W1o * Cout), lambda n: (0, 0)),
            pl.BlockSpec((K, W1o * Cout, W2o * Cout), lambda n: (0, 0, 0)),
            pl.BlockSpec((1, W2o * Cout), lambda n: (0, 0)),
        ],
        out_specs=pl.BlockSpec((1, H2o, W2o * Cout), lambda n: (n, 0, 0)),
        scratch_shapes=[pltpu.VMEM((P2h, W1o * Cout), jnp.float32)],
        compiler_params=pltpu.CompilerParams(
            dimension_semantics=("parallel",)),    # v7x: shard batch across 2 TCs
    )(xu_p, mk_p, t1, b1_t, t2, b2_t)

    # lane-dense slab -> NCHW
    out = out3.reshape(N, H2o, W2o, Cout)
    return jnp.transpose(out, (0, 3, 1, 2))


def _reference(x, ind, w1, b1, w2, b2, K, neg_slope=0.01):
    """Plain-JAX reference (scatter-form unpool + scatter-form transposed conv)."""
    N, Cin, H, W = x.shape
    Ho, Wo = 2 * H, 2 * W
    n_i = jnp.arange(N)[:, None, None]
    c_i = jnp.arange(Cin)[None, :, None]
    up = jnp.zeros((N, Cin, Ho * Wo), x.dtype)
    up = up.at[n_i, c_i, ind.reshape(N, Cin, H * W)].set(x.reshape(N, Cin, H * W))
    up = up.reshape(N, Cin, Ho, Wo)

    def convt(y, w, b):
        Nn, Ci, Hi, Wi = y.shape
        out = jnp.zeros((Nn, w.shape[1], Hi + K - 1, Wi + K - 1), jnp.float32)
        for kh in range(K):
            for kw in range(K):
                out = out.at[:, :, kh:kh + Hi, kw:kw + Wi].add(
                    jnp.einsum('nihw,io->nohw', y, w[:, :, kh, kw]))
        out = out + b[None, :, None, None]
        return jnp.where(out >= 0.0, out, neg_slope * out)

    return convt(convt(up, w1, b1), w2, b2)


if __name__ == "__main__":
    N, Cin, Cout, H, W, K = 2, 4, 8, 8, 8, 3
    key = jax.random.PRNGKey(0)
    kx, kdi, kdj, kw1, kb1, kw2, kb2 = jax.random.split(key, 7)

    x = jax.random.normal(kx, (N, Cin, H, W), jnp.float32)
    # MaxPool2d(2, return_indices=True)-style indices: each pooled cell points at one
    # location inside its own 2x2 window of the (2H, 2W) unpooled map.
    di = jax.random.randint(kdi, (N, Cin, H, W), 0, 2)
    dj = jax.random.randint(kdj, (N, Cin, H, W), 0, 2)
    ii = jnp.arange(H)[None, None, :, None]
    jj = jnp.arange(W)[None, None, None, :]
    ind = ((2 * ii + di) * (2 * W) + (2 * jj + dj)).astype(jnp.int32)

    # Deterministic synthetic parameters (shapes from nn.ConvTranspose2d).
    w1 = 0.1 * jax.random.normal(kw1, (Cin, Cout, K, K), jnp.float32)
    b1 = 0.1 * jax.random.normal(kb1, (Cout,), jnp.float32)
    w2 = 0.1 * jax.random.normal(kw2, (Cout, Cout, K, K), jnp.float32)
    b2 = 0.1 * jax.random.normal(kb2, (Cout,), jnp.float32)

    out = decoder_forward(x, ind, w1, b1, w2, b2, K)
    out = jax.block_until_ready(out)

    ref = _reference(x, ind, w1, b1, w2, b2, K)
    assert out.shape == (N, Cout, 2 * H + 2 * (K - 1), 2 * W + 2 * (K - 1)), out.shape
    err = float(jnp.max(jnp.abs(out - ref)))
    assert jnp.allclose(out, ref, atol=1e-4, rtol=1e-4), err
    print("KERNEL_OK")
</pallas_src>

<mosaic_0001>
module attributes {stable_mosaic.version = 11 : i64} {
  func.func @_decoder_kernel(%arg0: i32, %arg1: memref<1x20x64xf32, #tpu.memory_space<vmem>>, %arg2: memref<1x20x64xi8, #tpu.memory_space<vmem>>, %arg3: memref<3x64x144xf32, #tpu.memory_space<vmem>>, %arg4: memref<1x144xf32, #tpu.memory_space<vmem>>, %arg5: memref<3x144x160xf32, #tpu.memory_space<vmem>>, %arg6: memref<1x160xf32, #tpu.memory_space<vmem>>, %arg7: memref<1x20x160xf32, #tpu.memory_space<vmem>>, %arg8: memref<22x144xf32, #tpu.memory_space<vmem>>) attributes {dimension_semantics = [#tpu.dimension_semantics<parallel>], iteration_bounds = array<i64: 2>, scalar_prefetch = 0 : i64, scratch_operands = 1 : i64, tpu.core_type = #tpu.core_type<tc>, window_params = [{transform_indices = @transform_0, window_bounds = array<i64: 1, 20, 64>}, {transform_indices = @transform_1, window_bounds = array<i64: 1, 20, 64>}, {pipeline_mode = #tpu.pipeline_mode<synchronous>, transform_indices = @transform_2, window_bounds = array<i64: 3, 64, 144>}, {pipeline_mode = #tpu.pipeline_mode<synchronous>, transform_indices = @transform_3, window_bounds = array<i64: 1, 144>}, {pipeline_mode = #tpu.pipeline_mode<synchronous>, transform_indices = @transform_4, window_bounds = array<i64: 3, 144, 160>}, {pipeline_mode = #tpu.pipeline_mode<synchronous>, transform_indices = @transform_5, window_bounds = array<i64: 1, 160>}, {transform_indices = @transform_6, window_bounds = array<i64: 1, 20, 160>}]} {
    %c0 = arith.constant 0 : index
    %c0_0 = arith.constant 0 : index
    %c0_1 = arith.constant 0 : index
    %0 = vector.load %arg1[%c0, %c0_0, %c0_1] : memref<1x20x64xf32, #tpu.memory_space<vmem>>, vector<1x20x64xf32>
    %1 = vector.shape_cast %0 : vector<1x20x64xf32> to vector<20x64xf32>
    %c0_2 = arith.constant 0 : index
    %c0_3 = arith.constant 0 : index
    %c0_4 = arith.constant 0 : index
    %2 = vector.load %arg2[%c0_2, %c0_3, %c0_4] : memref<1x20x64xi8, #tpu.memory_space<vmem>>, vector<1x20x64xi8>
    %3 = vector.shape_cast %2 : vector<1x20x64xi8> to vector<20x64xi8>
    %4 = arith.sitofp %3 : vector<20x64xi8> to vector<20x64xf32>
    %cst = arith.constant 0.000000e+00 : f32
    %5 = vector.broadcast %cst : f32 to vector<20x64xf32>
    %6 = arith.cmpf ogt, %4, %5 : vector<20x64xf32>
    %cst_5 = arith.constant 0.000000e+00 : f32
    %7 = vector.broadcast %cst_5 : f32 to vector<20x64xf32>
    %8 = arith.select %6, %1, %7 : vector<20x64xi1>, vector<20x64xf32>
    %cst_6 = arith.constant 0.000000e+00 : f32
    %9 = vector.broadcast %cst_6 : f32 to vector<18x144xf32>
    %10 = vector.extract_strided_slice %8 {offsets = [0, 0], sizes = [18, 64], strides = [1, 1]} : vector<20x64xf32> to vector<18x64xf32>
    %c0_7 = arith.constant 0 : index
    %c0_8 = arith.constant 0 : index
    %c0_9 = arith.constant 0 : index
    %11 = vector.load %arg3[%c0_7, %c0_8, %c0_9] : memref<3x64x144xf32, #tpu.memory_space<vmem>>, vector<1x64x144xf32>
    %12 = vector.shape_cast %11 : vector<1x64x144xf32> to vector<64x144xf32>
    %cst_10 = arith.constant dense<0.000000e+00> : vector<18x144xf32>
    %13 = tpu.matmul %10, %12, %cst_10 {dimension_numbers = #tpu.dot_dimension_numbers<[1], [0], [0], [1], [0, 0, 1, 1], [], []>} : vector<18x64xf32>, vector<64x144xf32>, vector<18x144xf32> -> vector<18x144xf32>
    %14 = arith.addf %9, %13 : vector<18x144xf32>
    %15 = vector.extract_strided_slice %8 {offsets = [1, 0], sizes = [18, 64], strides = [1, 1]} : vector<20x64xf32> to vector<18x64xf32>
    %c1 = arith.constant 1 : index
    %c0_11 = arith.constant 0 : index
    %c0_12 = arith.constant 0 : index
    %16 = vector.load %arg3[%c1, %c0_11, %c0_12] : memref<3x64x144xf32, #tpu.memory_space<vmem>>, vector<1x64x144xf32>
    %17 = vector.shape_cast %16 : vector<1x64x144xf32> to vector<64x144xf32>
    %cst_13 = arith.constant dense<0.000000e+00> : vector<18x144xf32>
    %18 = tpu.matmul %15, %17, %cst_13 {dimension_numbers = #tpu.dot_dimension_numbers<[1], [0], [0], [1], [0, 0, 1, 1], [], []>} : vector<18x64xf32>, vector<64x144xf32>, vector<18x144xf32> -> vector<18x144xf32>
    %19 = arith.addf %14, %18 : vector<18x144xf32>
    %20 = vector.extract_strided_slice %8 {offsets = [2, 0], sizes = [18, 64], strides = [1, 1]} : vector<20x64xf32> to vector<18x64xf32>
    %c2 = arith.constant 2 : index
    %c0_14 = arith.constant 0 : index
    %c0_15 = arith.constant 0 : index
    %21 = vector.load %arg3[%c2, %c0_14, %c0_15] : memref<3x64x144xf32, #tpu.memory_space<vmem>>, vector<1x64x144xf32>
    %22 = vector.shape_cast %21 : vector<1x64x144xf32> to vector<64x144xf32>
    %cst_16 = arith.constant dense<0.000000e+00> : vector<18x144xf32>
    %23 = tpu.matmul %20, %22, %cst_16 {dimension_numbers = #tpu.dot_dimension_numbers<[1], [0], [0], [1], [0, 0, 1, 1], [], []>} : vector<18x64xf32>, vector<64x144xf32>, vector<18x144xf32> -> vector<18x144xf32>
    %24 = arith.addf %19, %23 : vector<18x144xf32>
    %c0_17 = arith.constant 0 : index
    %c0_18 = arith.constant 0 : index
    %25 = vector.load %arg4[%c0_17, %c0_18] : memref<1x144xf32, #tpu.memory_space<vmem>>, vector<1x144xf32>
    %26 = vector.broadcast %25 : vector<1x144xf32> to vector<18x144xf32>
    %27 = arith.addf %24, %26 : vector<18x144xf32>
    %cst_19 = arith.constant 0.000000e+00 : f32
    %28 = vector.broadcast %cst_19 : f32 to vector<18x144xf32>
    %29 = arith.cmpf oge, %27, %28 : vector<18x144xf32>
    %cst_20 = arith.constant 0.00999999977 : f32
    %30 = vector.broadcast %cst_20 : f32 to vector<18x144xf32>
    %31 = arith.mulf %30, %27 : vector<18x144xf32>
    %32 = arith.select %29, %27, %31 : vector<18x144xi1>, vector<18x144xf32>
    %cst_21 = arith.constant 0.000000e+00 : f32
    %33 = vector.broadcast %cst_21 : f32 to vector<2x144xf32>
    %c0_22 = arith.constant 0 : index
    %c0_23 = arith.constant 0 : index
    %34 = vector.load %arg8[%c0_22, %c0_23] : memref<22x144xf32, #tpu.memory_space<vmem>>, vector<2x144xf32>
    tpu.vector_store %arg8[%c0_22, %c0_23], %33 {strides = array<i32>} : memref<22x144xf32, #tpu.memory_space<vmem>>, vector<2x144xf32>,
    %c20 = arith.constant 20 : index
    %c0_24 = arith.constant 0 : index
    %35 = vector.load %arg8[%c20, %c0_24] : memref<22x144xf32, #tpu.memory_space<vmem>>, vector<2x144xf32>
    tpu.vector_store %arg8[%c20, %c0_24], %33 {strides = array<i32>} : memref<22x144xf32, #tpu.memory_space<vmem>>, vector<2x144xf32>,
    %c2_25 = arith.constant 2 : index
    %c0_26 = arith.constant 0 : index
    %36 = vector.load %arg8[%c2_25, %c0_26] : memref<22x144xf32, #tpu.memory_space<vmem>>, vector<18x144xf32>
    tpu.vector_store %arg8[%c2_25, %c0_26], %32 {strides = array<i32>} : memref<22x144xf32, #tpu.memory_space<vmem>>, vector<18x144xf32>,
    %cst_27 = arith.constant 0.000000e+00 : f32
    %37 = vector.broadcast %cst_27 : f32 to vector<20x160xf32>
    %c0_28 = arith.constant 0 : index
    %c0_29 = arith.constant 0 : index
    %38 = vector.load %arg8[%c0_28, %c0_29] : memref<22x144xf32, #tpu.memory_space<vmem>>, vector<20x144xf32>
    %c0_30 = arith.constant 0 : index
    %c0_31 = arith.constant 0 : index
    %c0_32 = arith.constant 0 : index
    %39 = vector.load %arg5[%c0_30, %c0_31, %c0_32] : memref<3x144x160xf32, #tpu.memory_space<vmem>>, vector<1x144x160xf32>
    %40 = vector.shape_cast %39 : vector<1x144x160xf32> to vector<144x160xf32>
    %cst_33 = arith.constant dense<0.000000e+00> : vector<20x160xf32>
    %41 = tpu.matmul %38, %40, %cst_33 {dimension_numbers = #tpu.dot_dimension_numbers<[1], [0], [0], [1], [0, 0, 1, 1], [], []>} : vector<20x144xf32>, vector<144x160xf32>, vector<20x160xf32> -> vector<20x160xf32>
    %42 = arith.addf %37, %41 : vector<20x160xf32>
    %c1_34 = arith.constant 1 : index
    %c0_35 = arith.constant 0 : index
    %43 = vector.load %arg8[%c1_34, %c0_35] : memref<22x144xf32, #tpu.memory_space<vmem>>, vector<20x144xf32>
    %c1_36 = arith.constant 1 : index
    %c0_37 = arith.constant 0 : index
    %c0_38 = arith.constant 0 : index
    %44 = vector.load %arg5[%c1_36, %c0_37, %c0_38] : memref<3x144x160xf32, #tpu.memory_space<vmem>>, vector<1x144x160xf32>
    %45 = vector.shape_cast %44 : vector<1x144x160xf32> to vector<144x160xf32>
    %cst_39 = arith.constant dense<0.000000e+00> : vector<20x160xf32>
    %46 = tpu.matmul %43, %45, %cst_39 {dimension_numbers = #tpu.dot_dimension_numbers<[1], [0], [0], [1], [0, 0, 1, 1], [], []>} : vector<20x144xf32>, vector<144x160xf32>, vector<20x160xf32> -> vector<20x160xf32>
    %47 = arith.addf %42, %46 : vector<20x160xf32>
    %c2_40 = arith.constant 2 : index
    %c0_41 = arith.constant 0 : index
    %48 = vector.load %arg8[%c2_40, %c0_41] : memref<22x144xf32, #tpu.memory_space<vmem>>, vector<20x144xf32>
    %c2_42 = arith.constant 2 : index
    %c0_43 = arith.constant 0 : index
    %c0_44 = arith.constant 0 : index
    %49 = vector.load %arg5[%c2_42, %c0_43, %c0_44] : memref<3x144x160xf32, #tpu.memory_space<vmem>>, vector<1x144x160xf32>
    %50 = vector.shape_cast %49 : vector<1x144x160xf32> to vector<144x160xf32>
    %cst_45 = arith.constant dense<0.000000e+00> : vector<20x160xf32>
    %51 = tpu.matmul %48, %50, %cst_45 {dimension_numbers = #tpu.dot_dimension_numbers<[1], [0], [0], [1], [0, 0, 1, 1], [], []>} : vector<20x144xf32>, vector<144x160xf32>, vector<20x160xf32> -> vector<20x160xf32>
    %52 = arith.addf %47, %51 : vector<20x160xf32>
    %c0_46 = arith.constant 0 : index
    %c0_47 = arith.constant 0 : index
    %53 = vector.load %arg6[%c0_46, %c0_47] : memref<1x160xf32, #tpu.memory_space<vmem>>, vector<1x160xf32>
    %54 = vector.broadcast %53 : vector<1x160xf32> to vector<20x160xf32>
    %55 = arith.addf %52, %54 : vector<20x160xf32>
    %cst_48 = arith.constant 0.000000e+00 : f32
    %56 = vector.broadcast %cst_48 : f32 to vector<20x160xf32>
    %57 = arith.cmpf oge, %55, %56 : vector<20x160xf32>
    %cst_49 = arith.constant 0.00999999977 : f32
    %58 = vector.broadcast %cst_49 : f32 to vector<20x160xf32>
    %59 = arith.mulf %58, %55 : vector<20x160xf32>
    %60 = arith.select %57, %55, %59 : vector<20x160xi1>, vector<20x160xf32>
    %c0_50 = arith.constant 0 : index
    %c0_51 = arith.constant 0 : index
    %c0_52 = arith.constant 0 : index
    %61 = vector.load %arg7[%c0_50, %c0_51, %c0_52] : memref<1x20x160xf32, #tpu.memory_space<vmem>>, vector<1x20x160xf32>
    %62 = vector.shape_cast %61 : vector<1x20x160xf32> to vector<20x160xf32>
    %63 = vector.shape_cast %60 : vector<20x160xf32> to vector<1x20x160xf32>
    tpu.vector_store %arg7[%c0_50, %c0_51, %c0_52], %63 {strides = array<i32>} : memref<1x20x160xf32, #tpu.memory_space<vmem>>, vector<1x20x160xf32>,
    return
  }
  func.func @transform_0(%arg0: i32) -> (i32, i32, i32) {
    %c0_i32 = arith.constant 0 : i32
    %c0_i32_0 = arith.constant 0 : i32
    %c0_i32_1 = arith.constant 0 : i32
    return %arg0, %c0_i32, %c0_i32_0 : i32, i32, i32
  }
  func.func @transform_1(%arg0: i32) -> (i32, i32, i32) {
    %c0_i32 = arith.constant 0 : i32
    %c0_i32_0 = arith.constant 0 : i32
    %c0_i32_1 = arith.constant 0 : i32
    return %arg0, %c0_i32, %c0_i32_0 : i32, i32, i32
  }
  func.func @transform_2(%arg0: i32) -> (i32, i32, i32) {
    %c0_i32 = arith.constant 0 : i32
    %c0_i32_0 = arith.constant 0 : i32
    %c0_i32_1 = arith.constant 0 : i32
    %c0_i32_2 = arith.constant 0 : i32
    return %c0_i32, %c0_i32_0, %c0_i32_1 : i32, i32, i32
  }
  func.func @transform_3(%arg0: i32) -> (i32, i32) {
    %c0_i32 = arith.constant 0 : i32
    %c0_i32_0 = arith.constant 0 : i32
    %c0_i32_1 = arith.constant 0 : i32
    return %c0_i32, %c0_i32_0 : i32, i32
  }
  func.func @transform_4(%arg0: i32) -> (i32, i32, i32) {
    %c0_i32 = arith.constant 0 : i32
    %c0_i32_0 = arith.constant 0 : i32
    %c0_i32_1 = arith.constant 0 : i32
    %c0_i32_2 = arith.constant 0 : i32
    return %c0_i32, %c0_i32_0, %c0_i32_1 : i32, i32, i32
  }
  func.func @transform_5(%arg0: i32) -> (i32, i32) {
    %c0_i32 = arith.constant 0 : i32
    %c0_i32_0 = arith.constant 0 : i32
    %c0_i32_1 = arith.constant 0 : i32
    return %c0_i32, %c0_i32_0 : i32, i32
  }
  func.func @transform_6(%arg0: i32) -> (i32, i32, i32) {
    %c0_i32 = arith.constant 0 : i32
    %c0_i32_0 = arith.constant 0 : i32
    %c0_i32_1 = arith.constant 0 : i32
    return %arg0, %c0_i32, %c0_i32_0 : i32, i32, i32
  }
}

</mosaic_0001>

<bundles_post_ra>
// kernel: tpu_custom_call.1
= control target key start
LH: loop header
LB: loop body
LE: loop exit
PB: predicated region body
PF: predicated region fallthrough
CT: control target
= control target key end

     0   :  { %11 = vsyncpa [#allocation4], 0  ;;  %s1655_s0 = inlined_call_operand.vmem [shape: f32[2,20,64], index: 0, kind: input, shape index: {}]   ;;  %s1656_s1 = inlined_call_operand.vmem [shape: s8[2,20,64], index: 1, kind: input, shape index: {}]   ;;  %s1657_s2 = inlined_call_operand.hbm [shape: f32[3,64,144], index: 2, kind: input, shape index: {}]   ;;  %s1658_s3 = inlined_call_operand.vmem [shape: f32[1,144], index: 3, kind: input, shape index: {}]   ;;  %s1659_s4 = inlined_call_operand.hbm [shape: f32[3,144,160], index: 4, kind: input, shape index: {}]   ;;  %s1660_s5 = inlined_call_operand.vmem [shape: f32[1,160], index: 5, kind: input, shape index: {}]   ;;  %s1661_s6 = inlined_call_operand.vmem [shape: f32[2,20,160], index: 6, kind: output, shape index: {}]  }
   0x1   :  { %12 = vsyncpa [#allocation6], 0  ;;  %s1480_s21 = smov 0  }
   0x2 LB: > { %s1486_s22 = sadd.s32 4294967295, %s1438_s21   ;;  %p1303_p0 = scmp.ge.s32.totalorder %s1438_s21, 1  ;;  %s1438_s21 = sphi %s1480_s21, %s18_s21  }
   0x3   : > { %p185_p1 = scmp.lt.s32.totalorder %s1438_s21, 3  ;;  %s1440_s23 = smov [#allocation3]  }
   0x4   : > { %s197_s24 = sshll.u32 %s1440_s23, 4  ;;  %p1355_p3 = scmp.eq.s32.totalorder %s1486_s22, 0  ;;  %s198_s24 = int_to_ptr.vmem [resolvable:$true] %s197_s24 }
   0x5   : > { %p1490_p2 = pnand %p1303_p0, %p185_p1  ;;  %s1441_s26 = smov [#allocation5]  }
   0x6   : > { %s213_s27 = sshll.u32 %s1441_s26, 4  ;;  %s1383_s29 = scalar_lea.vmem %s198_s24, 6144  ;;  %s214_s27 = int_to_ptr.vmem [resolvable:$true] %s213_s27 }
   0x7   : > { %p1348_p4 = pneg %p1490_p2  ;;  %p1384_p7 = scmp.ne.s32.totalorder %s198_s24, %s1383_s29 }
   0x8   : > { %p1391_p10 = scmp.lt.s32.totalorder %s198_s24, %s198_s24  ;;  %p1392_p11 = scmp.lt.s32.totalorder %s1383_s29, %s1383_s29 }
   0x9   : > { %p1499_p5 = pnand %p1355_p3, %p1348_p4 }
   0xa   : > { %p1393_p12 = por %p1392_p11, %p1391_p10 }
   0xb   : > { %p1374_p6 = pneg %p1499_p5 }
   0xd   : > { %p1386_p8 = pnand %p1384_p7, %p1374_p6 }
   0xf   : > { %p1387_p9 = pneg %p1386_p8 }
  0x11   : > { %p1394_p13 = pnand %p1393_p12, %p1387_p9 }
  0x13   : > { %1397 = shalt.err (!%p1394_p13)
}
  0x14   : > { %s1442_s30 = smov 256   ;;  %s1443_s7 = smov 16  }
  0x15   : > { %1351 = dma.hbm_to_vmem [thread:$0]  (!%p1499_p5), %s1657_s2, 6144, %s198_s24, [#allocation4], %s1442_s30, %s1442_s30, %s1443_s7  }
  0x16   : > { %s1409_s10 = scalar_lea.vmem %s214_s27, 13824  ;;  %p1417_p7 = scmp.lt.s32.totalorder %s214_s27, %s214_s27 }
  0x17   : > { %p1410_p0 = scmp.ne.s32.totalorder %s214_s27, %s1409_s10  ;;  %p1418_p8 = scmp.lt.s32.totalorder %s1409_s10, %s1409_s10 }
  0x19   : > { %p1412_p1 = pnand %p1410_p0, %p1374_p6  ;;  %p1419_p10 = por %p1418_p8, %p1417_p7 }
  0x1b   : > { %p1413_p4 = pneg %p1412_p1 }
  0x1d   : > { %p1420_p9 = pnand %p1419_p10, %p1413_p4 }
  0x1f   : > { %1423 = shalt.err (!%p1420_p9)
}
  0x20   : > { %1354 = dma.hbm_to_vmem [thread:$0]  (!%p1499_p5), %s1659_s4, 13824, %s214_s27, [#allocation6], %s1442_s30, %s1442_s30, %s1443_s7  }
  0x21   : > { %248 = sbr.rel (%p1490_p2) target bundleno = 559 (0x22f), region = 44 }
  0x26   : > { %1429 = dma.done.wait (%p1355_p3), [#allocation4], 6144  }
  0x27   : > { %1431 = vsyncadd (%p1355_p3), [#allocation4], 4294961152 }
  0x28   : > { %1433 = dma.done.wait (%p1355_p3), [#allocation6], 13824  }
  0x29   : > { %1435 = vsyncadd (%p1355_p3), [#allocation6], 4294953472  ;;  %p287_p6 = scmp.lt.s32.totalorder %s1486_s22, 1  ;;  %v1444_v0 = vmov 0.0   ;;  %v352_v1 = vld [vmem:[#allocation3 + $0xf8] sm:$0xff]  ;;  %v351_v2 = vld [vmem:[#allocation3 + $0xf0] sm:$0xff] }
  0x2a   : > { %433 = vmatprep.mubr.f32.mxu0 %v1444_v0  ;;  %695 = vst [vmem:[#allocation2] sm:$0x3] %v1444_v0  ;;  %698 = vst [vmem:[#allocation2 + $0x20] sm:$0x30] %v1444_v0  ;;  %v350_v3 = vld [vmem:[#allocation3 + $0xe8] sm:$0xff]  ;;  %385 = vmatprep.subr.mxu0 %v352_v1  ;;  %v349_v4 = vld [vmem:[#allocation3 + $0xe0] sm:$0xff] }
  0x2b   : > { %s1665_s22 = smov (!%p287_p6, %s1486_s22), 1  ;;  %386 = vmatpush1.msra.mxu0 %v351_v2  ;;  %v348_v5 = vld [vmem:[#allocation3 + $0xd8] sm:$0xff]  ;;  %v347_v6 = vld [vmem:[#allocation3 + $0xd0] sm:$0xff]  ;;  %v346_v7 = vld [vmem:[#allocation3 + $0xc8] sm:$0xff]  ;;  %vm356_vm2 = vcmask 1046528   ;;  %vm362_vm3 = vcmask 523264  }
  0x2c   : > { %s1338_s13 = smul.u32 6, %s1665_s22  ;;  %387 = vmatprep.subr.mxu0 %v350_v3  ;;  %v345_v8 = vld [vmem:[#allocation3 + $0xc0] sm:$0xff]  ;;  %v344_v9 = vld [vmem:[#allocation3 + $0xb8] sm:$0xff]  ;;  %v343_v11 = vld [vmem:[#allocation3 + $0xb0] sm:$0xff]  ;;  %vm558_vm5 = vcmask 1045504   ;;  %vm696_vm6 = vcmask 123904  }
  0x2d   : > { %s1337_s14 = smul.u32 24, %s1665_s22  ;;  %388 = vmatpush1.msra.mxu0 %v349_v4  ;;  %v342_v14 = vld [vmem:[#allocation3 + $0xa8] sm:$0xff]  ;;  %v341_v15 = vld [vmem:[#allocation3 + $0xa0] sm:$0xff]  ;;  %v340_v21 = vld [vmem:[#allocation3 + $0x98] sm:$0xff]  ;;  %697 = vst.msk [vmem:[#allocation2 + $0x8] sm:$0x3] %vm696_vm6, %v1444_v0 }
  0x2e   : > { %s296_s17 = scalar_lea.vmem %s1656_s1, %s1338_s13  ;;  %389 = vmatprep.subr.mxu0 %v348_v5  ;;  %v339_v23 = vld [vmem:[#allocation3 + $0x90] sm:$0xff]  ;;  %v338_v24 = vld [vmem:[#allocation3 + $0x88] sm:$0xff]  ;;  %v337_v29 = vld [vmem:[#allocation3 + $0x80] sm:$0xff]  ;;  %vm699_vm7 = vcmask 128004   ;;  %vm725_vm10 = vcmask 130050   ;;  %vm707_vm12 = vcmask 1041408  }
  0x2f   : > { %390 = vmatpush1.msra.mxu0 %v347_v6  ;;  %s291_s20 = scalar_lea.vmem %s1655_s0, %s1337_s14  ;;  %v1334_v10 = vld [vmem:[%s296_s17] sm:$0xf]   ;;  %v307_v20 = vld [vmem:[%s296_s17 + $0x4] sm:$0x1]  ;;  %v335_v32 = vld [vmem:[#allocation3 + $0x78] sm:$0xff]  ;;  %vm728_vm15 = vcmask 130048  }
  0x30   : > { %391 = vmatprep.subr.mxu0 %v346_v7  ;;  %v1335_v12 = vunpack.c.0.s8 %v1334_v10  ;;  %v1336_v13 = vunpack.c.1.s8 %v1334_v10  ;;  %v302_v16 = vld [vmem:[%s291_s20] sm:$0xff]  ;;  %v303_v17 = vld [vmem:[%s291_s20 + $0x8] sm:$0xff]  ;;  %v310_v22 = vunpack.c.0.s8 %v307_v20  ;;  %v304_v27 = vld [vmem:[%s291_s20 + $0x10] sm:$0xf]  ;;  %700 = vst.msk [vmem:[#allocation2 + $0x28] sm:$0x30] %vm699_vm7, %v1444_v0 }
  0x31   : > { %392 = vmatpush1.msra.mxu0 %v345_v8  ;;  %v334_v34 = vld [vmem:[#allocation3 + $0x70] sm:$0xff]  ;;  %v333_v36 = vld [vmem:[#allocation3 + $0x68] sm:$0xff]  ;;  %v332_v38 = vld [vmem:[#allocation3 + $0x60] sm:$0xff]  ;;  %s1339_s27 = smul.u32 48, %s1665_s22 }
  0x32   : > { %393 = vmatprep.subr.mxu0 %v344_v9  ;;  %v311_v18 = vcvt.s32.f32 %v1335_v12  ;;  %v312_v19 = vcvt.s32.f32 %v1336_v13  ;;  %v313_v28 = vcvt.s32.f32 %v310_v22  ;;  %v331_v39 = vld [vmem:[#allocation3 + $0x58] sm:$0xff]  ;;  %v330_v41 = vld [vmem:[#allocation3 + $0x50] sm:$0xff]  ;;  %v329_v42 = vld [vmem:[#allocation3 + $0x48] sm:$0xff] }
  0x33   : > { %394 = vmatpush1.msra.mxu0 %v343_v11  ;;  %v328_v43 = vld [vmem:[#allocation3 + $0x40] sm:$0xff]  ;;  %v327_v44 = vld [vmem:[#allocation3 + $0x38] sm:$0xff]  ;;  %v326_v45 = vld [vmem:[#allocation3 + $0x30] sm:$0xff]  ;;  %s1642_s30 = scalar_lea.vmem %s1661_s6, %s1339_s27 }
  0x34   : > { %395 = vmatprep.subr.mxu0 %v342_v14  ;;  %vm314_vm0 = vcmp.gt.f32.partialorder %v311_v18, 0.0  ;;  %vm315_vm1 = vcmp.gt.f32.partialorder %v312_v19, 0.0  ;;  %vm316_vm4 = vcmp.gt.f32.partialorder %v313_v28, 0.0  ;;  %v325_v46 = vld [vmem:[#allocation3 + $0x28] sm:$0xff]  ;;  %v324_v47 = vld [vmem:[#allocation3 + $0x20] sm:$0xff]  ;;  %v323_v48 = vld [vmem:[#allocation3 + $0x18] sm:$0xff] }
  0x35   : > { %396 = vmatpush1.msra.mxu0 %v341_v15  ;;  %v1546_v25 = vsel %vm314_vm0, %v302_v16, 0.0  ;;  %v1548_v26 = vsel %vm315_vm1, %v303_v17, 0.0  ;;  %v1553_v35 = vsel %vm316_vm4, %v304_v27, 0.0  ;;  %v322_v49 = vld [vmem:[#allocation3 + $0x10] sm:$0xff]  ;;  %v321_v50 = vld [vmem:[#allocation3 + $0x8] sm:$0xff]  ;;  %v320_v51 = vld [vmem:[#allocation3] sm:$0xff] }
  0x36   : > { %397 = vmatprep.subr.mxu0 %v340_v21  ;;  %v357_v30 = vrot.slane %v1546_v25, 1  ;;  %v358_v31 = vrot.slane %v1548_v26, 1  ;;  %v360_v37 = vrot.slane %v1553_v35, 1  ;;  %v557_v52 = vld [vmem:[#allocation3 + $0x178] sm:$0xff]  ;;  %v556_v53 = vld [vmem:[#allocation3 + $0x170] sm:$0xff]  ;;  %v555_v54 = vld [vmem:[#allocation3 + $0x168] sm:$0xff] }
  0x37   : > { %398 = vmatpush1.msra.mxu0 %v339_v23  ;;  %v554_v55 = vld [vmem:[#allocation3 + $0x160] sm:$0xff]  ;;  %v553_v56 = vld [vmem:[#allocation3 + $0x158] sm:$0xff]  ;;  %v552_v57 = vld [vmem:[#allocation3 + $0x150] sm:$0xff]  ;;  %v559_v1 = vrot.slane %v1546_v25, 2  ;;  %v560_v2 = vrot.slane %v1548_v26, 2  ;;  %v562_v8 = vrot.slane %v1553_v35, 2 }
  0x38   : > { %399 = vmatprep.subr.mxu0 %v338_v24  ;;  %v359_v33 = vsel %vm356_vm2, %v357_v30, %v358_v31  ;;  %v361_v40 = vsel %vm356_vm2, %v358_v31, %v360_v37  ;;  %v551_v58 = vld [vmem:[#allocation3 + $0x148] sm:$0xff]  ;;  %v550_v59 = vld [vmem:[#allocation3 + $0x140] sm:$0xff]  ;;  %v549_v60 = vld [vmem:[#allocation3 + $0x138] sm:$0xff]  ;;  %vm731_vm1 = vcmask 125952  }
  0x39   : > { %400 = vmatpush1.msra.mxu0 %v337_v29  ;;  %v548_v61 = vld [vmem:[#allocation3 + $0x130] sm:$0xff]  ;;  %v547_v62 = vld [vmem:[#allocation3 + $0x128] sm:$0xff]  ;;  %v546_v63 = vld [vmem:[#allocation3 + $0x120] sm:$0xff]  ;;  %v561_v7 = vsel %vm558_vm5, %v559_v1, %v560_v2  ;;  %v563_v9 = vsel %vm558_vm5, %v560_v2, %v562_v8 }
  0x3a   : > { %1313 = vmatmul.mubr.msk.f32.vlgmr.msra.gmra.mxu0 %vm362_vm3, %v359_v33  ;;  %474 = vmatprep.subr.mxu0 %v335_v32  ;;  %v545_v3 = vld [vmem:[#allocation3 + $0x118] sm:$0xff]  ;;  %v544_v4 = vld [vmem:[#allocation3 + $0x110] sm:$0xff]  ;;  %v543_v5 = vld [vmem:[#allocation3 + $0x108] sm:$0xff] }
  0x3b   : > { %475 = vmatpush1.msra.mxu0 %v334_v34  ;;  %439 = vmatprep.mubr.f32.mxu0 %v1444_v0  ;;  %v542_v6 = vld [vmem:[#allocation3 + $0x100] sm:$0xff]  ;;  %v770_v10 = vld [vmem:[#allocation5 + $0xf8] sm:$0xff]  ;;  %v769_v11 = vld [vmem:[#allocation5 + $0xf0] sm:$0xff] }
  0x3c   : > { %476 = vmatprep.subr.mxu0 %v333_v36  ;;  %v768_v12 = vld [vmem:[#allocation5 + $0xe8] sm:$0xff]  ;;  %v767_v13 = vld [vmem:[#allocation5 + $0xe0] sm:$0xff]  ;;  %v766_v14 = vld [vmem:[#allocation5 + $0xd8] sm:$0xff] }
  0x3d   : > { %477 = vmatpush1.msra.mxu0 %v332_v38  ;;  %v765_v15 = vld [vmem:[#allocation5 + $0xd0] sm:$0xff]  ;;  %v764_v16 = vld [vmem:[#allocation5 + $0xc8] sm:$0xff]  ;;  %v811_v17 = vld [vmem:[#allocation5 + $0x218] sm:$0xff] }
  0x3e   : > { %478 = vmatprep.subr.mxu0 %v331_v39  ;;  %1314 = vmatmul.mubr.msk.f32.gmra.mxu0 %vm362_vm3, %v361_v40  ;;  %v763_v18 = vld [vmem:[#allocation5 + $0xc0] sm:$0xff]  ;;  %v810_v19 = vld [vmem:[#allocation5 + $0x210] sm:$0xff]  ;;  %v762_v20 = vld [vmem:[#allocation5 + $0xb8] sm:$0xff] }
  0x3f   : > { %479 = vmatpush1.msra.mxu0 %v330_v41  ;;  %445 = vmatprep.mubr.f32.mxu0 %v1444_v0  ;;  %v809_v21 = vld [vmem:[#allocation5 + $0x208] sm:$0xff]  ;;  %v761_v22 = vld [vmem:[#allocation5 + $0xb0] sm:$0xff]  ;;  %v808_v23 = vld [vmem:[#allocation5 + $0x200] sm:$0xff] }
  0x40   : > { %480 = vmatprep.subr.mxu0 %v329_v42  ;;  %841 = vmatprep.subr.mxu1 %v811_v17  ;;  %v760_v24 = vld [vmem:[#allocation5 + $0xa8] sm:$0xff]  ;;  %v806_v27 = vld [vmem:[#allocation5 + $0x1f0] sm:$0xff]  ;;  %v758_v28 = vld [vmem:[#allocation5 + $0x98] sm:$0xff] }
  0x41   : > { %481 = vmatpush1.msra.mxu0 %v328_v43  ;;  %842 = vmatpush1.msra.mxu1 %v810_v19  ;;  %v805_v29 = vld [vmem:[#allocation5 + $0x1e8] sm:$0xff]  ;;  %v757_v30 = vld [vmem:[#allocation5 + $0x90] sm:$0xff]  ;;  %v804_v31 = vld [vmem:[#allocation5 + $0x1e0] sm:$0xff] }
  0x42   : > { %482 = vmatprep.subr.mxu0 %v327_v44  ;;  %1315 = vmatmul.mubr.msk.f32.gmra.mxu0 %vm362_vm3, %v360_v37  ;;  %v756_v32 = vld [vmem:[#allocation5 + $0x88] sm:$0xff]  ;;  %v803_v33 = vld [vmem:[#allocation5 + $0x1d8] sm:$0xff]  ;;  %v755_v34 = vld [vmem:[#allocation5 + $0x80] sm:$0xff] }
  0x43   : > { %483 = vmatpush1.msra.mxu0 %v326_v45  ;;  %522 = vmatprep.mubr.f32.mxu0 %v1444_v0  ;;  %v754_v36 = vld [vmem:[#allocation5 + $0x78] sm:$0xff]  ;;  %v801_v37 = vld [vmem:[#allocation5 + $0x1c8] sm:$0xff]  ;;  %v753_v38 = vld [vmem:[#allocation5 + $0x70] sm:$0xff] }
  0x44   : > { %484 = vmatprep.subr.mxu0 %v325_v46  ;;  %843 = vmatprep.subr.mxu1 %v809_v21  ;;  %v800_v39 = vld [vmem:[#allocation5 + $0x1c0] sm:$0xff]  ;;  %v752_v40 = vld [vmem:[#allocation5 + $0x68] sm:$0xff]  ;;  %v799_v41 = vld [vmem:[#allocation5 + $0x1b8] sm:$0xff] }
  0x45   : > { %485 = vmatpush1.msra.mxu0 %v324_v47  ;;  %844 = vmatpush1.msra.mxu1 %v808_v23  ;;  %v751_v42 = vld [vmem:[#allocation5 + $0x60] sm:$0xff]  ;;  %v798_v43 = vld [vmem:[#allocation5 + $0x1b0] sm:$0xff]  ;;  %v750_v44 = vld [vmem:[#allocation5 + $0x58] sm:$0xff] }
  0x46   : > { %486 = vmatprep.subr.mxu0 %v323_v48  ;;  %v797_v45 = vld [vmem:[#allocation5 + $0x1a8] sm:$0xff]  ;;  %v749_v46 = vld [vmem:[#allocation5 + $0x50] sm:$0xff]  ;;  %v796_v47 = vld [vmem:[#allocation5 + $0x1a0] sm:$0xff] }
  0x47   : > { %487 = vmatpush1.msra.mxu0 %v322_v49  ;;  %v748_v48 = vld [vmem:[#allocation5 + $0x48] sm:$0xff]  ;;  %v795_v49 = vld [vmem:[#allocation5 + $0x198] sm:$0xff] }
  0x48   : > { %488 = vmatprep.subr.mxu0 %v321_v50  ;;  %v747_v50 = vld [vmem:[#allocation5 + $0x40] sm:$0xff]  ;;  %v740_v1 = vld [vmem:[#allocation5 + $0x8] sm:$0xff]  ;;  %v787_v2 = vld [vmem:[#allocation5 + $0x158] sm:$0xff] }
  0x49   : > { %489 = vmatpush1.msra.mxu0 %v320_v51  ;;  %v794_v51 = vld [vmem:[#allocation5 + $0x190] sm:$0xff]  ;;  %v813_v17 = vld [vmem:[#allocation5 + $0x228] sm:$0xff]  ;;  %v1051_v19 = vld [vmem:[#allocation5 + $0x338] sm:$0xff] }
  0x4a   : > { %1316 = vmatmul.mubr.msk.f32.vlgmr.msra.gmra.mxu0 %vm362_vm3, %v1546_v25  ;;  %586 = vmatprep.subr.mxu0 %v557_v52  ;;  %v807_v25 = vld [vmem:[#allocation5 + $0x1f8] sm:$0xff] }
  0x4b   : > { %587 = vmatpush1.msra.mxu0 %v556_v53  ;;  %528 = vmatprep.mubr.f32.mxu0 %v1444_v0  ;;  %v746_v52 = vld [vmem:[#allocation5 + $0x38] sm:$0xff]  ;;  %v793_v53 = vld [vmem:[#allocation5 + $0x188] sm:$0xff] }
  0x4c   : > { %588 = vmatprep.subr.mxu0 %v555_v54  ;;  %845 = vmatprep.subr.mxu1 %v807_v25  ;;  %v745_v54 = vld [vmem:[#allocation5 + $0x30] sm:$0xff] }
  0x4d   : > { %589 = vmatpush1.msra.mxu0 %v554_v55  ;;  %846 = vmatpush1.msra.mxu1 %v806_v27  ;;  %v792_v55 = vld [vmem:[#allocation5 + $0x180] sm:$0xff] }
  0x4e   : > { %1317 = vmatmul.mubr.msk.f32.gmra.mxu0 %vm362_vm3, %v1548_v26  ;;  %590 = vmatprep.subr.mxu0 %v553_v56  ;;  %v759_v26 = vld [vmem:[#allocation5 + $0xa0] sm:$0xff]  ;;  %v744_v56 = vld [vmem:[#allocation5 + $0x28] sm:$0xff] }
  0x4f   : > { %591 = vmatpush1.msra.mxu0 %v552_v57  ;;  %534 = vmatprep.mubr.f32.mxu0 %v1444_v0  ;;  %v791_v57 = vld [vmem:[#allocation5 + $0x178] sm:$0xff] }
  0x50   : > { %592 = vmatprep.subr.mxu0 %v551_v58  ;;  %847 = vmatprep.subr.mxu1 %v805_v29  ;;  %v743_v58 = vld [vmem:[#allocation5 + $0x20] sm:$0xff] }
  0x51   : > { %593 = vmatpush1.msra.mxu0 %v550_v59  ;;  %848 = vmatpush1.msra.mxu1 %v804_v31  ;;  %v790_v59 = vld [vmem:[#allocation5 + $0x170] sm:$0xff] }
  0x52   : > { %1318 = vmatmul.mubr.msk.f32.gmra.mxu0 %vm362_vm3, %v1553_v35  ;;  %594 = vmatprep.subr.mxu0 %v549_v60  ;;  %v802_v35 = vld [vmem:[#allocation5 + $0x1d0] sm:$0xff]  ;;  %v742_v60 = vld [vmem:[#allocation5 + $0x18] sm:$0xff] }
  0x53   : > { %595 = vmatpush1.msra.mxu0 %v548_v61  ;;  %634 = vmatprep.mubr.f32.mxu0 %v1444_v0  ;;  %v789_v61 = vld [vmem:[#allocation5 + $0x168] sm:$0xff] }
  0x54   : > { %596 = vmatprep.subr.mxu0 %v547_v62  ;;  %849 = vmatprep.subr.mxu1 %v803_v33  ;;  %v741_v62 = vld [vmem:[#allocation5 + $0x10] sm:$0xff] }
  0x55   : > { %597 = vmatpush1.msra.mxu0 %v546_v63  ;;  %850 = vmatpush1.msra.mxu1 %v802_v35  ;;  %v788_v63 = vld [vmem:[#allocation5 + $0x160] sm:$0xff]  ;;  %v659_v33 = vld [vmem:[%s1658_s3] sm:$0x3] }
  0x56   : > { %598 = vmatprep.subr.mxu0 %v545_v3  ;;  %851 = vmatprep.subr.mxu1 %v801_v37  ;;  %v739_v3 = vld [vmem:[#allocation5] sm:$0xff] }
  0x57   : > { %599 = vmatpush1.msra.mxu0 %v544_v4  ;;  %852 = vmatpush1.msra.mxu1 %v800_v39  ;;  %v786_v4 = vld [vmem:[#allocation5 + $0x150] sm:$0xff] }
  0x58   : > { %600 = vmatprep.subr.mxu0 %v543_v5  ;;  %853 = vmatprep.subr.mxu1 %v799_v41  ;;  %v774_v5 = vld [vmem:[#allocation5 + $0x118] sm:$0xff] }
  0x59   : > { %601 = vmatpush1.msra.mxu0 %v542_v6  ;;  %854 = vmatpush1.msra.mxu1 %v798_v43  ;;  %v785_v6 = vld [vmem:[#allocation5 + $0x148] sm:$0xff] }
  0x5a   : > { %1319 = vmatmul.mubr.msk.f32.vlgmr.msra.gmra.mxu0 %vm362_vm3, %v561_v7  ;;  %932 = vmatprep.subr.mxu0 %v770_v10  ;;  %v773_v7 = vld [vmem:[#allocation5 + $0x110] sm:$0xff]  ;;  %v783_v10 = vld [vmem:[#allocation5 + $0x138] sm:$0xff] }
  0x5b   : > { %640 = vmatprep.mubr.f32.mxu0 %v1444_v0  ;;  %933 = vmatpush1.msra.mxu0 %v769_v11  ;;  %v771_v11 = vld [vmem:[#allocation5 + $0x100] sm:$0xff] }
  0x5c   : > { %934 = vmatprep.subr.mxu0 %v768_v12  ;;  %855 = vmatprep.subr.mxu1 %v797_v45  ;;  %v782_v12 = vld [vmem:[#allocation5 + $0x130] sm:$0xff] }
  0x5d   : > { %935 = vmatpush1.msra.mxu0 %v767_v13  ;;  %856 = vmatpush1.msra.mxu1 %v796_v47  ;;  %v781_v13 = vld [vmem:[#allocation5 + $0x128] sm:$0xff] }
  0x5e   : > { %1320 = vmatmul.mubr.msk.f32.gmra.mxu0 %vm362_vm3, %v563_v9  ;;  %936 = vmatprep.subr.mxu0 %v766_v14  ;;  %v772_v9 = vld [vmem:[#allocation5 + $0x108] sm:$0xff]  ;;  %v780_v14 = vld [vmem:[#allocation5 + $0x120] sm:$0xff] }
  0x5f   : > { %646 = vmatprep.mubr.f32.mxu0 %v1444_v0  ;;  %937 = vmatpush1.msra.mxu0 %v765_v15  ;;  %v815_v15 = vld [vmem:[#allocation5 + $0x238] sm:$0xff] }
  0x60   : > { %938 = vmatprep.subr.mxu0 %v764_v16  ;;  %857 = vmatprep.subr.mxu1 %v795_v49  ;;  %v814_v16 = vld [vmem:[#allocation5 + $0x230] sm:$0xff] }
  0x61   : > { %939 = vmatpush1.msra.mxu0 %v763_v18  ;;  %858 = vmatpush1.msra.mxu1 %v794_v51  ;;  %v812_v18 = vld [vmem:[#allocation5 + $0x220] sm:$0xff] }
  0x62   : > { %1321 = vmatmul.mubr.msk.f32.gmra.mxu0 %vm362_vm3, %v562_v8  ;;  %940 = vmatprep.subr.mxu0 %v762_v20  ;;  %v784_v8 = vld [vmem:[#allocation5 + $0x140] sm:$0xff]  ;;  %vm1205_vm3 = vcmask 261120  }
  0x63   : > { %941 = vmatpush1.msra.mxu0 %v761_v22  ;;  %859 = vmatprep.subr.mxu1 %v793_v53 }
  0x64   : > { %942 = vmatprep.subr.mxu0 %v760_v24  ;;  %860 = vmatpush1.msra.mxu1 %v792_v55 }
  0x65   : > { %943 = vmatpush1.msra.mxu0 %v759_v26  ;;  %861 = vmatprep.subr.mxu1 %v791_v57 }
  0x66   : > { %944 = vmatprep.subr.mxu0 %v758_v28  ;;  %862 = vmatpush1.msra.mxu1 %v790_v59  ;;  %v661_v28 = vlaneseq }
  0x67   : > { %945 = vmatpush1.msra.mxu0 %v757_v30  ;;  %863 = vmatprep.subr.mxu1 %v789_v61 }
  0x68   : > { %946 = vmatprep.subr.mxu0 %v756_v32  ;;  %864 = vmatpush1.msra.mxu1 %v788_v63  ;;  %v1584_v30 = vshrl.u32 %v661_v28, 7 }
  0x69   : > { %947 = vmatpush1.msra.mxu0 %v755_v34  ;;  %865 = vmatprep.subr.mxu1 %v787_v2 }
  0x6a   : > { %948 = vmatprep.subr.mxu0 %v754_v36  ;;  %866 = vmatpush1.msra.mxu1 %v786_v4  ;;  %v663_v32 = vsub.s32 0, %v1584_v30  ;;  %v667_v34 = vsub.s32 1, %v1584_v30 }
  0x6b   : > { %949 = vmatpush1.msra.mxu0 %v753_v38  ;;  %867 = vmatprep.subr.mxu1 %v785_v6 }
  0x6c   : > { %950 = vmatprep.subr.mxu0 %v752_v40  ;;  %868 = vmatpush1.msra.mxu1 %v784_v8  ;;  %v664_v37 = vrot.slane %v659_v33, %v663_v32  ;;  %v668_v41 = vrot.slane %v659_v33, %v667_v34 }
  0x6d   : > { %951 = vmatpush1.msra.mxu0 %v751_v42  ;;  %869 = vmatprep.subr.mxu1 %v783_v10 }
  0x6e   : > { %952 = vmatprep.subr.mxu0 %v750_v44  ;;  %870 = vmatpush1.msra.mxu1 %v782_v12 }
  0x6f   : > { %953 = vmatpush1.msra.mxu0 %v749_v46  ;;  %871 = vmatprep.subr.mxu1 %v781_v13 }
  0x70   : > { %954 = vmatprep.subr.mxu0 %v748_v48  ;;  %872 = vmatpush1.msra.mxu1 %v780_v14 }
  0x71   : > { %955 = vmatpush1.msra.mxu0 %v747_v50  ;;  %901 = vmatprep.subr.mxu1 %v815_v15 }
  0x72   : > { %956 = vmatprep.subr.mxu0 %v746_v52  ;;  %902 = vmatpush2.msra.mxu1 %v814_v16 }
  0x73   : > { %957 = vmatpush1.msra.mxu0 %v745_v54  ;;  %903 = vmatprep.subr.mxu1 %v813_v17 }
  0x74   : > { %958 = vmatprep.subr.mxu0 %v744_v56  ;;  %904 = vmatpush2.msra.mxu1 %v812_v18 }
  0x75   : > { %959 = vmatpush1.msra.mxu0 %v743_v58  ;;  %1079 = vmatprep.subr.mxu1 %v1051_v19 }
  0x76   : > { %960 = vmatprep.subr.mxu0 %v742_v60 }
  0x77   : > { %961 = vmatpush1.msra.mxu0 %v741_v62 }
  0x78   : > { %962 = vmatprep.subr.mxu0 %v740_v1 }
  0x79   : > { %963 = vmatpush1.msra.mxu0 %v739_v3 }
  0x7a   : > { %992 = vmatprep.subr.mxu0 %v774_v5 }
  0x7b   : > { %993 = vmatpush2.msra.mxu0 %v773_v7 }
  0x7c   : > { %994 = vmatprep.subr.mxu0 %v772_v9 }
  0x7d   : > { %995 = vmatpush2.msra.mxu0 %v771_v11 }
  0xfa   : > { %v435_v20 = vpop.f32.mrf.mxu0 }
  0xfc   : > { %v437_v21 = vpop.f32.mrf.mxu0 }
  0xfe   : > { %v441_v22 = vpop.f32.mrf.mxu0 }
 0x100   : > { %v443_v23 = vpop.f32.mrf.mxu0 }
 0x102   : > { %v447_v24 = vpop.f32.mrf.mxu0 }
 0x104   : > { %v449_v25 = vpop.f32.mrf.mxu0 }
 0x10a   : > { %v524_v26 = vpop.f32.mrf.mxu0 }
 0x10b   : > { %v525_v36 = vadd.f32 %v524_v26, %v435_v20 }
 0x10c   : > { %v526_v27 = vpop.f32.mrf.mxu0 }
 0x10d   : > { %v527_v39 = vadd.f32 %v526_v27, %v437_v21 }
 0x10e   : > { %v530_v29 = vpop.f32.mrf.mxu0 }
 0x10f   : > { %v531_v43 = vadd.f32 %v530_v29, %v441_v22 }
 0x110   : > { %v532_v0 = vpop.f32.mrf.mxu0 }
 0x111   : > { %v533_v50 = vadd.f32 %v532_v0, %v443_v23 }
 0x112   : > { %v536_v31 = vpop.f32.mrf.mxu0 }
 0x113   : > { %v537_v51 = vadd.f32 %v536_v31, %v447_v24 }
 0x114   : > { %v538_v35 = vpop.f32.mrf.mxu0 }
 0x115   : > { %v539_v56 = vadd.f32 %v538_v35, %v449_v25  ;;  %v1050_v35 = vld [vmem:[#allocation5 + $0x330] sm:$0xff] }
 0x11a   : > { %v636_v38 = vpop.f32.mrf.mxu0 }
 0x11b   : > { %v653_v40 = vadd.f32 %v636_v38, %v525_v36  ;;  %v1049_v38 = vld [vmem:[#allocation5 + $0x328] sm:$0xff] }
 0x11c   : > { %v638_v42 = vpop.f32.mrf.mxu0 }
 0x11d   : > { %v671_v44 = vadd.f32 %v664_v37, %v653_v40  ;;  %v654_v45 = vadd.f32 %v638_v42, %v527_v39  ;;  %v1048_v42 = vld [vmem:[#allocation5 + $0x320] sm:$0xff] }
 0x11e   : > { %v642_v46 = vpop.f32.mrf.mxu0 }
 0x11f   : > { %vm677_vm8 = vcmp.ge.f32.partialorder %v671_v44, 0.0  ;;  %v683_v47 = vmul.f32 0.01, %v671_v44  ;;  %v672_v48 = vadd.f32 %v668_v41, %v654_v45  ;;  %v655_v49 = vadd.f32 %v642_v46, %v531_v43  ;;  %v1046_v45 = vld [vmem:[#allocation5 + $0x310] sm:$0xff] }
 0x120   : > { %v644_v52 = vpop.f32.mrf.mxu0 }
 0x121   : > { %v689_v53 = vsel %vm677_vm8, %v671_v44, %v683_v47  ;;  %vm678_vm9 = vcmp.ge.f32.partialorder %v672_v48, 0.0  ;;  %v684_v54 = vmul.f32 0.01, %v672_v48  ;;  %v673_v55 = vadd.f32 %v664_v37, %v655_v49  ;;  %v1047_v44 = vld [vmem:[#allocation5 + $0x318] sm:$0xff]  ;;  %v1045_v47 = vld [vmem:[#allocation5 + $0x308] sm:$0xff] }
 0x122   : > { %v708_v57 = vrot.slane %v689_v53, 6  ;;  %v656_v58 = vadd.f32 %v644_v52, %v533_v50  ;;  %v648_v59 = vpop.f32.mrf.mxu0  ;;  %v1044_v50 = vld [vmem:[#allocation5 + $0x300] sm:$0xff]  ;;  %v1042_v52 = vld [vmem:[#allocation5 + $0x2f0] sm:$0xff] }
 0x123   : > { %v690_v60 = vsel %vm678_vm9, %v672_v48, %v684_v54  ;;  %vm679_vm11 = vcmp.ge.f32.partialorder %v673_v55, 0.0  ;;  %v685_v61 = vmul.f32 0.01, %v673_v55  ;;  %v657_v62 = vadd.f32 %v648_v59, %v537_v51  ;;  %v1043_v51 = vld [vmem:[#allocation5 + $0x2f8] sm:$0xff]  ;;  %v1041_v54 = vld [vmem:[#allocation5 + $0x2e8] sm:$0xff] }
 0x124   : > { %724 = vst [vmem:[#allocation2] sm:$0xfc] %v708_v57  ;;  %v709_v63 = vrot.slane %v690_v60, 6  ;;  %v674_v1 = vadd.f32 %v668_v41, %v656_v58  ;;  %v650_v2 = vpop.f32.mrf.mxu0  ;;  %v1038_v58 = vld [vmem:[#allocation5 + $0x2d0] sm:$0xff]  ;;  %v1037_v59 = vld [vmem:[#allocation5 + $0x2c8] sm:$0xff]  ;;  %v1036_v60 = vld [vmem:[#allocation5 + $0x2c0] sm:$0xff] }
 0x125   : > { %v691_v3 = vsel %vm679_vm11, %v673_v55, %v685_v61  ;;  %v675_v4 = vadd.f32 %v664_v37, %v657_v62  ;;  %v658_v5 = vadd.f32 %v650_v2, %v539_v56  ;;  %v1040_v56 = vld [vmem:[#allocation5 + $0x2e0] sm:$0xff]  ;;  %v1035_v61 = vld [vmem:[#allocation5 + $0x2b8] sm:$0xff]  ;;  %v1034_v62 = vld [vmem:[#allocation5 + $0x2b0] sm:$0xff]  ;;  %vm1210_vm9 = vcmask 257024  }
 0x126   : > { %726 = vst.msk [vmem:[#allocation2 + $0x8] sm:$0xfc] %vm725_vm10, %v709_v63  ;;  %v710_v6 = vrot.slane %v691_v3, 6  ;;  %vm680_vm13 = vcmp.ge.f32.partialorder %v674_v1, 0.0  ;;  %v686_v7 = vmul.f32 0.01, %v674_v1 }
 0x127   : > { %vm681_vm14 = vcmp.ge.f32.partialorder %v675_v4, 0.0  ;;  %v687_v8 = vmul.f32 0.01, %v675_v4  ;;  %v676_v9 = vadd.f32 %v668_v41, %v658_v5  ;;  %v1031_v2 = vld [vmem:[#allocation5 + $0x298] sm:$0xff]  ;;  %v1030_v3 = vld [vmem:[#allocation5 + $0x290] sm:$0xff]  ;;  %v1028_v5 = vld [vmem:[#allocation5 + $0x280] sm:$0xff] }
 0x128   : > { %v1596_v10 = vsel %vm707_vm12, %v708_v57, %v710_v6  ;;  %v692_v11 = vsel %vm680_vm13, %v674_v1, %v686_v7  ;;  %v1039_v57 = vld [vmem:[#allocation5 + $0x2d8] sm:$0xff]  ;;  %v1032_v1 = vld [vmem:[#allocation5 + $0x2a0] sm:$0xff]  ;;  %v1026_v7 = vld [vmem:[#allocation5 + $0x270] sm:$0xff] }
 0x129   : > { %v712_v12 = vrot.slane %v692_v11, 6  ;;  %v693_v13 = vsel %vm681_vm14, %v675_v4, %v687_v8  ;;  %vm682_vm0 = vcmp.ge.f32.partialorder %v676_v9, 0.0  ;;  %v688_v14 = vmul.f32 0.01, %v676_v9  ;;  %v1029_v4 = vld [vmem:[#allocation5 + $0x288] sm:$0xff]  ;;  %v1023_v11 = vld [vmem:[#allocation5 + $0x258] sm:$0xff] }
 0x12a   : > { %v714_v15 = vrot.slane %v693_v13, 6  ;;  %v823_v0 = vrot.slane %v1596_v10, 1  ;;  %v1025_v8 = vld [vmem:[#allocation5 + $0x268] sm:$0xff] }
 0x12b   : > { %v713_v16 = vsel %vm707_vm12, %v709_v63, %v712_v12  ;;  %v694_v17 = vsel %vm682_vm0, %v676_v9, %v688_v14  ;;  %v733_v22 = vld [vmem:[#allocation2] sm:$0xff]  ;;  %v1033_v63 = vld [vmem:[#allocation5 + $0x2a8] sm:$0xff]  ;;  %v1024_v9 = vld [vmem:[#allocation5 + $0x260] sm:$0xff] }
 0x12c   : > { %729 = vst.msk [vmem:[#allocation2 + $0x18] sm:$0xff] %vm728_vm15, %v713_v16  ;;  %v715_v18 = vsel %vm707_vm12, %v710_v6, %v714_v15  ;;  %v716_v19 = vrot.slane %v694_v17, 6  ;;  %v775_v23 = vld [vmem:[#allocation2] sm:$0xfe]  ;;  %v1027_v6 = vld [vmem:[#allocation5 + $0x278] sm:$0xff]  ;;  %v1021_v13 = vld [vmem:[#allocation5 + $0x248] sm:$0xff] }
 0x12d   : > { %730 = vst [vmem:[#allocation2 + $0x20] sm:$0xf] %v715_v18  ;;  %v734_v20 = vld [vmem:[#allocation2 + $0x8] sm:$0xff]  ;;  %v822_v26 = vrot.slane %v775_v23, 1  ;;  %v1020_v14 = vld [vmem:[#allocation5 + $0x240] sm:$0xff]  ;;  %v1054_v18 = vld [vmem:[#allocation5 + $0x350] sm:$0xff] }
 0x12e   : > { %v717_v21 = vsel %vm707_vm12, %v712_v12, %v716_v19  ;;  %1325 = vmatprep.mubr.msk.f32.mxu0 %vm728_vm15, %v734_v20  ;;  %v776_v24 = vld [vmem:[#allocation2 + $0x8] sm:$0xfe]  ;;  %v1022_v12 = vld [vmem:[#allocation5 + $0x250] sm:$0xff]  ;;  %v1053_v19 = vld [vmem:[#allocation5 + $0x348] sm:$0xff] }
 0x12f   : > { %732 = vst.msk [vmem:[#allocation2 + $0x28] sm:$0xf] %vm731_vm1, %v717_v21  ;;  %997 = vmatmul.mubr.f32.vlgmr.msra.gmra.mxu0 %v733_v22  ;;  %v825_v27 = vrot.slane %v776_v24, 1  ;;  %v824_v37 = vsel %vm356_vm2, %v822_v26, %v823_v0  ;;  %v1016_v48 = vld [vmem:[#allocation2 + $0x8] sm:$0xfc]  ;;  %v1052_v21 = vld [vmem:[#allocation5 + $0x340] sm:$0xff] }
 0x130   : > { %v1063_v53 = vrot.slane %v1016_v48, 2  ;;  %v1015_v15 = vld [vmem:[#allocation2] sm:$0xfc]  ;;  %v1055_v16 = vld [vmem:[#allocation5 + $0x358] sm:$0xff]  ;;  %v1061_v24 = vrot.slane %v1596_v10, 2 }
 0x131   : > { %v1060_v20 = vrot.slane %v1015_v15, 2 }
 0x133   : > { %v1603_v25 = vld [vmem:[#allocation2 + $0x18] sm:$0xff]  ;;  %v1062_v26 = vsel %vm558_vm5, %v1060_v20, %v1061_v24 }
 0x134   : > { %1326 = vmatprep.mubr.msk.f32.mxu0 %vm728_vm15, %v1603_v25  ;;  %v826_v28 = vrot.slane %v1603_v25, 1  ;;  %v777_v29 = vld [vmem:[#allocation2 + $0x20] sm:$0x1f]  ;;  %v1064_v49 = vrot.slane %v1603_v25, 2 }
 0x135   : > { %1003 = vmatmul.mubr.f32.gmra.mxu0 %v1596_v10  ;;  %v828_v40 = vrot.slane %v777_v29, 1  ;;  %v737_v41 = vld [vmem:[#allocation2 + $0x20] sm:$0xf] }
 0x136   : > { %v827_v31 = vsel %vm356_vm2, %v825_v27, %v826_v28  ;;  %v738_v33 = vld [vmem:[#allocation2 + $0x28] sm:$0xf]  ;;  %v1065_v55 = vsel %vm558_vm5, %v1063_v53, %v1064_v49  ;;  %v1017_v23 = vld [vmem:[#allocation2 + $0x20] sm:$0x3f] }
 0x137   : > { %v778_v36 = vld [vmem:[#allocation2 + $0x28] sm:$0x1f]  ;;  %1322 = vmatprep.mubr.msk.f32.mxu1 %vm728_vm15, %v827_v31  ;;  %1327 = vmatprep.mubr.msk.f32.mxu0 %vm728_vm15, %v738_v33  ;;  %v829_v46 = vsel %vm356_vm2, %v823_v0, %v828_v40  ;;  %v1066_v27 = vrot.slane %v1017_v23, 2  ;;  %v1168_v25 = vld [vmem:[%s1660_s5] sm:$0x3] }
 0x138   : > { %v830_v39 = vrot.slane %v778_v36, 1  ;;  %906 = vmatmul.mubr.f32.vlgmr.msra.gmra.mxu1 %v824_v37  ;;  %v1018_v17 = vld [vmem:[#allocation2 + $0x28] sm:$0x3f] }
 0x139   : > { %1080 = vmatpush1.msra.mxu1 %v1050_v35  ;;  %1009 = vmatmul.mubr.f32.gmra.mxu0 %v737_v41  ;;  %v1068_v22 = vrot.slane %v1018_v17, 2  ;;  %v1067_v29 = vsel %vm558_vm5, %v1061_v24, %v1066_v27 }
 0x13a   : > { %v831_v43 = vsel %vm356_vm2, %v826_v28, %v830_v39  ;;  %1081 = vmatprep.subr.mxu1 %v1049_v38 }
 0x13b   : > { %1323 = vmatprep.mubr.msk.f32.mxu1 %vm728_vm15, %v831_v43  ;;  %1082 = vmatpush1.msra.mxu1 %v1048_v42  ;;  %v1069_v28 = vsel %vm558_vm5, %v1064_v49, %v1068_v22  ;;  %v1173_v42 = vrot.slane %v1168_v25, %v663_v32 }
 0x13c   : > { %1083 = vmatprep.subr.mxu1 %v1047_v44  ;;  %912 = vmatmul.mubr.f32.gmra.mxu1 %v829_v46  ;;  %v1177_v46 = vrot.slane %v1168_v25, %v667_v34 }
 0x13d   : > { %1084 = vmatpush1.msra.mxu1 %v1046_v45  ;;  %1324 = vmatprep.mubr.msk.f32.mxu1 %vm728_vm15, %v830_v39 }
 0x13e   : > { %1085 = vmatprep.subr.mxu1 %v1045_v47 }
 0x13f   : > { %1086 = vmatpush1.msra.mxu1 %v1044_v50 }
 0x140   : > { %1087 = vmatprep.subr.mxu1 %v1043_v51  ;;  %918 = vmatmul.mubr.f32.gmra.mxu1 %v828_v40 }
 0x141   : > { %1088 = vmatpush1.msra.mxu1 %v1042_v52  ;;  %1328 = vmatprep.mubr.msk.f32.mxu1 %vm728_vm15, %v1065_v55 }
 0x142   : > { %1089 = vmatprep.subr.mxu1 %v1041_v54 }
 0x143   : > { %1090 = vmatpush1.msra.mxu1 %v1040_v56 }
 0x144   : > { %1091 = vmatprep.subr.mxu1 %v1039_v57 }
 0x145   : > { %1092 = vmatpush1.msra.mxu1 %v1038_v58 }
 0x146   : > { %1093 = vmatprep.subr.mxu1 %v1037_v59 }
 0x147   : > { %1094 = vmatpush1.msra.mxu1 %v1036_v60 }
 0x148   : > { %1095 = vmatprep.subr.mxu1 %v1035_v61 }
 0x149   : > { %1096 = vmatpush1.msra.mxu1 %v1034_v62 }
 0x14a   : > { %1097 = vmatprep.subr.mxu1 %v1033_v63 }
 0x14b   : > { %1098 = vmatpush1.msra.mxu1 %v1032_v1 }
 0x14c   : > { %1099 = vmatprep.subr.mxu1 %v1031_v2 }
 0x14d   : > { %1100 = vmatpush1.msra.mxu1 %v1030_v3 }
 0x14e   : > { %1101 = vmatprep.subr.mxu1 %v1029_v4 }
 0x14f   : > { %1102 = vmatpush1.msra.mxu1 %v1028_v5 }
 0x150   : > { %1103 = vmatprep.subr.mxu1 %v1027_v6 }
 0x151   : > { %1104 = vmatpush1.msra.mxu1 %v1026_v7 }
 0x152   : > { %1105 = vmatprep.subr.mxu1 %v1025_v8 }
 0x153   : > { %1106 = vmatpush1.msra.mxu1 %v1024_v9 }
 0x154   : > { %1107 = vmatprep.subr.mxu1 %v1023_v11 }
 0x155   : > { %1108 = vmatpush1.msra.mxu1 %v1022_v12 }
 0x156   : > { %1109 = vmatprep.subr.mxu1 %v1021_v13 }
 0x157   : > { %1110 = vmatpush1.msra.mxu1 %v1020_v14 }
 0x158   : > { %1139 = vmatprep.subr.mxu1 %v1055_v16 }
 0x159   : > { %1140 = vmatpush2.msra.mxu1 %v1054_v18 }
 0x15a   : > { %1141 = vmatprep.subr.mxu1 %v1053_v19 }
 0x15b   : > { %1142 = vmatpush2.msra.mxu1 %v1052_v21 }
 0x15c   : > { %1144 = vmatmul.mubr.f32.vlgmr.msra.gmra.mxu1 %v1062_v26 }
 0x15d   : > { %1329 = vmatprep.mubr.msk.f32.mxu1 %vm728_vm15, %v1069_v28 }
 0x160   : > { %1150 = vmatmul.mubr.f32.gmra.mxu1 %v1067_v29 }
 0x161   : > { %1330 = vmatprep.mubr.msk.f32.mxu1 %vm728_vm15, %v1068_v22 }
 0x164   : > { %1156 = vmatmul.mubr.f32.gmra.mxu1 %v1066_v27 }
 0x1ef   : > { %v998_v33 = vpop.f32.mrf.mxu0 }
 0x1f1   : > { %v1000_v36 = vpop.f32.mrf.mxu0 }
 0x1f5   : > { %v1004_v38 = vpop.f32.mrf.mxu0 }
 0x1f7   : > { %v1006_v40 = vpop.f32.mrf.mxu0 }
 0x1f8   : > { %v907_v10 = vpop.f32.mrf.mxu1 }
 0x1f9   : > { %v999_v41 = vadd.f32 %v998_v33, %v907_v10  ;;  %v1010_v48 = vpop.f32.mrf.mxu0 }
 0x1fa   : > { %v909_v0 = vpop.f32.mrf.mxu1 }
 0x1fb   : > { %v1001_v44 = vadd.f32 %v1000_v36, %v909_v0  ;;  %v1012_v34 = vpop.f32.mrf.mxu0 }
 0x1fc   : > { %v913_v31 = vpop.f32.mrf.mxu1 }
 0x1fd   : > { %v1005_v49 = vadd.f32 %v1004_v38, %v913_v31 }
 0x1fe   : > { %v915_v35 = vpop.f32.mrf.mxu1 }
 0x1ff   : > { %v1007_v55 = vadd.f32 %v1006_v40, %v915_v35 }
 0x200   : > { %v919_v37 = vpop.f32.mrf.mxu1 }
 0x201   : > { %v1011_v56 = vadd.f32 %v1010_v48, %v919_v37 }
 0x202   : > { %v921_v39 = vpop.f32.mrf.mxu1 }
 0x203   : > { %v1013_v60 = vadd.f32 %v1012_v34, %v921_v39 }
 0x21c   : > { %v1145_v43 = vpop.f32.mrf.mxu1 }
 0x21d   : > { %v1162_v45 = vadd.f32 %v1145_v43, %v999_v41 }
 0x21e   : > { %v1147_v47 = vpop.f32.mrf.mxu1 }
 0x21f   : > { %v1180_v50 = vadd.f32 %v1173_v42, %v1162_v45  ;;  %v1163_v51 = vadd.f32 %v1147_v47, %v1001_v44 }
 0x220   : > { %v1151_v52 = vpop.f32.mrf.mxu1 }
 0x221   : > { %vm1186_vm2 = vcmp.ge.f32.partialorder %v1180_v50, 0.0  ;;  %v1192_v32 = vmul.f32 0.01, %v1180_v50  ;;  %v1181_v53 = vadd.f32 %v1177_v46, %v1163_v51  ;;  %v1164_v54 = vadd.f32 %v1151_v52, %v1005_v49 }
 0x222   : > { %v1153_v30 = vpop.f32.mrf.mxu1 }
 0x223   : > { %v1198_v57 = vsel %vm1186_vm2, %v1180_v50, %v1192_v32  ;;  %vm1187_vm4 = vcmp.ge.f32.partialorder %v1181_v53, 0.0  ;;  %v1193_v58 = vmul.f32 0.01, %v1181_v53  ;;  %v1182_v59 = vadd.f32 %v1173_v42, %v1164_v54 }
 0x224   : > { %1204 = vst [vmem:[%s1642_s30] sm:$0xff] %v1198_v57  ;;  %v1165_v61 = vadd.f32 %v1153_v30, %v1007_v55  ;;  %v1157_v62 = vpop.f32.mrf.mxu1 }
 0x225   : > { %v1199_v63 = vsel %vm1187_vm4, %v1181_v53, %v1193_v58  ;;  %vm1188_vm5 = vcmp.ge.f32.partialorder %v1182_v59, 0.0  ;;  %v1194_v1 = vmul.f32 0.01, %v1182_v59  ;;  %v1166_v2 = vadd.f32 %v1157_v62, %v1011_v56 }
 0x226   : > { %1206 = vst.msk [vmem:[%s1642_s30 + $0x8] sm:$0xff] %vm1205_vm3, %v1199_v63  ;;  %v1183_v3 = vadd.f32 %v1177_v46, %v1165_v61  ;;  %v1159_v4 = vpop.f32.mrf.mxu1 }
 0x227   : > { %v1200_v5 = vsel %vm1188_vm5, %v1182_v59, %v1194_v1  ;;  %v1184_v6 = vadd.f32 %v1173_v42, %v1166_v2  ;;  %v1167_v7 = vadd.f32 %v1159_v4, %v1013_v60 }
 0x228   : > { %1207 = vst [vmem:[%s1642_s30 + $0x10] sm:$0xff] %v1200_v5  ;;  %vm1189_vm6 = vcmp.ge.f32.partialorder %v1183_v3, 0.0  ;;  %v1195_v8 = vmul.f32 0.01, %v1183_v3 }
 0x229   : > { %vm1190_vm7 = vcmp.ge.f32.partialorder %v1184_v6, 0.0  ;;  %v1196_v9 = vmul.f32 0.01, %v1184_v6  ;;  %v1185_v11 = vadd.f32 %v1177_v46, %v1167_v7 }
 0x22a   : > { %v1201_v12 = vsel %vm1189_vm6, %v1183_v3, %v1195_v8 }
 0x22b   : > { %1208 = vst.msk [vmem:[%s1642_s30 + $0x18] sm:$0xff] %vm1205_vm3, %v1201_v12  ;;  %v1202_v13 = vsel %vm1190_vm7, %v1184_v6, %v1196_v9  ;;  %vm1191_vm8 = vcmp.ge.f32.partialorder %v1185_v11, 0.0  ;;  %v1197_v14 = vmul.f32 0.01, %v1185_v11 }
 0x22c   : > { %1209 = vst [vmem:[%s1642_s30 + $0x20] sm:$0xf] %v1202_v13 }
 0x22d   : > { %v1203_v15 = vsel %vm1191_vm8, %v1185_v11, %v1197_v14 }
 0x22e   : > { %1211 = vst.msk [vmem:[%s1642_s30 + $0x28] sm:$0xf] %vm1210_vm9, %v1203_v15 }
 0x22f PF: > { %s18_s21 = sadd.s32 1, %s1438_s21  }
 0x230   : > { %p15_p2 = scmp.ge.s32.totalorder %s18_s21, 4  }
 0x232   :  { %17 = sbr.rel (!%p15_p2) target bundleno = 2 (0x2), region = 90 }
 0x237   :  { %1233 = vsyncpa [#allocation4], 1 }
 0x238   :  { %1235 = vsyncpa [#allocation4 + $0x1], 1 }
 0x239   :  { %1236 = vsyncpa [#allocation6], 1 }

</bundles_post_ra>
